<compile_context>
chip_gen: v6e
topology: v6e:2x2x1
jax: 0.10.0
libtpu: 0.0.40
codegen_flags: <defaults>
</compile_context>

<pallas_src>
import functools

import numpy as np
import jax
import jax.numpy as jnp
from jax.experimental import pallas as pl
from jax.experimental.pallas import tpu as pltpu


def _interp_matrix(out_size: int, in_size: int) -> np.ndarray:
    """Dense matrix M (out, in) s.t. M @ v == F.interpolate(v, out, mode='bilinear',
    align_corners=False) along one axis (PyTorch half-pixel convention)."""
    if out_size == in_size:
        return np.eye(out_size, dtype=np.float32)
    scale = in_size / out_size
    o = np.arange(out_size, dtype=np.float64)
    src = (o + 0.5) * scale - 0.5
    src = np.maximum(src, 0.0)                        # PyTorch clamps negative src to 0
    x0 = np.floor(src).astype(np.int64)
    x0 = np.minimum(x0, in_size - 1)
    x1 = np.minimum(x0 + 1, in_size - 1)
    lam = (src - x0).astype(np.float32)
    M = np.zeros((out_size, in_size), dtype=np.float32)
    oi = np.arange(out_size)
    M[oi, x0] += (1.0 - lam)
    M[oi, x1] += lam
    return M


def _coarse_pred_loss_kernel(ignore_index, cp_ref, wy_ref, wxT_ref, tgt_ref,
                             up_ref, loss_ref, cnt_ref, t1_ref):
    # cp_ref : (C, h, w)    coarse logits of one image (input dtype)
    # wy_ref : (Hb, h)      row-interpolation matrix block for this row tile
    # wxT_ref: (w, W)       column-interpolation matrix (transposed)
    # tgt_ref: (Hb, W)      int32 class labels for this row tile
    # up_ref : (C, Hb, W)   upsampled logits tile (output)
    # loss_ref, cnt_ref: (1, 1)  per-image CE sum / valid-pixel count
    #                            (resident accumulators across row tiles)
    # t1_ref : (C, h, W)    VMEM scratch holding cp @ Wx^T for the whole image
    yb = pl.program_id(1)
    C, Hb, W = up_ref.shape
    _, h, w = cp_ref.shape

    @pl.when(yb == 0)
    def _():
        loss_ref[...] = jnp.zeros_like(loss_ref)
        cnt_ref[...] = jnp.zeros_like(cnt_ref)
        cp = cp_ref[...]                              # keep input dtype (bf16 OK)
        wxT = wxT_ref[...]
        if h % 8 == 0:
            # One fused MXU matmul over all channels: (C*h, w) @ (w, W).
            t1 = jnp.dot(cp.reshape(C * h, w), wxT,
                         preferred_element_type=jnp.float32)
            t1_ref[...] = t1.reshape(C, h, W).astype(t1_ref.dtype)
        else:
            # Fallback for odd coarse heights (keeps layouts trivially legal).
            for c in range(C):
                t1c = jnp.dot(cp[c], wxT, preferred_element_type=jnp.float32)
                t1_ref[c] = t1c.astype(t1_ref.dtype)

    wy = wy_ref[...]                                  # (Hb, h), input dtype
    tgt = tgt_ref[...]                                # (Hb, W) int32

    # Pass 1 over channels: row-interpolation matmul, store the lane-dense tile,
    # and track the running channel-max (for a stable logsumexp).
    m = jnp.full((Hb, W), -jnp.inf, dtype=jnp.float32)
    for c in range(C):
        up_c = jnp.dot(wy, t1_ref[c], preferred_element_type=jnp.float32)  # (Hb, W)
        upq_c = up_c.astype(up_ref.dtype)
        up_ref[c] = upq_c
        m = jnp.maximum(m, upq_c.astype(jnp.float32))

    # Pass 2: exp-sum + target-select, read back from the stored (VMEM-resident)
    # output tile so the loss is computed on exactly the stored precision.
    s = jnp.zeros((Hb, W), dtype=jnp.float32)
    sel = jnp.zeros((Hb, W), dtype=jnp.float32)
    for c in range(C):
        xc = up_ref[c].astype(jnp.float32)
        s = s + jnp.exp(xc - m)
        sel = sel + jnp.where(tgt == c, xc, 0.0)

    lse = m + jnp.log(s)
    valid = tgt != ignore_index
    loss_ref[...] = loss_ref[...] + jnp.sum(jnp.where(valid, lse - sel, 0.0))
    cnt_ref[...] = cnt_ref[...] + jnp.sum(valid.astype(jnp.float32))


def coarse_pred_loss(coarse_pred, target, resize_type='pred',
                     ignore_index=-100, h_block=None):
    """JAX/Pallas equivalent of CoarsePredLoss.forward with layer = CrossEntropyLoss().

    coarse_pred: (N, C, h, w) float logits
    target     : (N, H, W)    int class labels (ignore_index pixels excluded)
    Returns (result_dict, loss_dict) like the PyTorch module (result carries the
    possibly-resized 'coarse_pred').
    """
    N, C, h, w = coarse_pred.shape
    H, W = target.shape[-2], target.shape[-1]
    assert resize_type == 'pred'
    # TODO(synk): resize_type == 'target' branch (bilinear-resizing the target) not implemented.

    dtype = coarse_pred.dtype
    # Interpolation matrices in the input dtype (bf16 inputs -> bf16 MXU operands).
    Wy = jnp.asarray(_interp_matrix(H, h)).astype(dtype)       # (H, h)
    WxT = jnp.asarray(_interp_matrix(W, w).T).astype(dtype)    # (w, W)
    target = target.astype(jnp.int32)

    if h_block is None:
        h_block = H
        for cand in (128, 64, 32, 16, 8):                      # row tiles, mult of 8
            if H % cand == 0:
                h_block = cand
                break
    assert H % h_block == 0 and (h_block % 8 == 0 or h_block == H)
    n_hb = H // h_block

    up, loss_sum, cnt = pl.pallas_call(
        functools.partial(_coarse_pred_loss_kernel, ignore_index),
        out_shape=(
            jax.ShapeDtypeStruct((N, C, H, W), dtype),
            jax.ShapeDtypeStruct((N, 1, 1), jnp.float32),
            jax.ShapeDtypeStruct((N, 1, 1), jnp.float32),
        ),
        grid_spec=pltpu.PrefetchScalarGridSpec(
            num_scalar_prefetch=0,
            grid=(N, n_hb),
            in_specs=[
                pl.BlockSpec((None, C, h, w), lambda n, yb: (n, 0, 0, 0)),   # coarse_pred[n]
                pl.BlockSpec((h_block, h), lambda n, yb: (yb, 0)),           # Wy row tile
                pl.BlockSpec((w, W), lambda n, yb: (0, 0)),                  # Wx^T (replicated)
                pl.BlockSpec((None, h_block, W), lambda n, yb: (n, yb, 0)),  # target tile
            ],
            out_specs=[
                pl.BlockSpec((None, C, h_block, W), lambda n, yb: (n, 0, yb, 0)),  # up tile
                pl.BlockSpec((None, 1, 1), lambda n, yb: (n, 0, 0)),               # per-n loss
                pl.BlockSpec((None, 1, 1), lambda n, yb: (n, 0, 0)),               # per-n count
            ],
            scratch_shapes=[pltpu.VMEM((C, h, W), dtype)],                   # cp @ Wx^T cache
        ),
        compiler_params=pltpu.CompilerParams(
            dimension_semantics=("parallel", "arbitrary"),   # batch parallel, rows accumulate
            vmem_limit_bytes=64 * 1024 * 1024),
    )(coarse_pred, Wy, WxT, target)

    total = jnp.sum(loss_sum)
    count = jnp.sum(cnt)
    loss = total / jnp.maximum(count, 1.0)                    # mean over valid pixels
    result = {'coarse_pred': up}
    return result, {'coarse_loss': loss}


if __name__ == "__main__":
    key = jax.random.PRNGKey(0)
    k1, k2 = jax.random.split(key)

    # Small shapes implied by the module: coarse pred at half resolution of the target.
    N, C, h, w = 2, 4, 8, 8
    H, W = 16, 16
    coarse_pred = jax.random.normal(k1, (N, C, h, w), dtype=jnp.float32)
    target = jax.random.randint(k2, (N, H, W), 0, C, dtype=jnp.int32)
    # A few ignored pixels (nn.CrossEntropyLoss default ignore_index = -100).
    target = target.at[0, 0, :3].set(-100)
    target = target.at[1, 5, 7].set(-100)

    # h_block=8 -> 2 row tiles per image, exercising the row-tiled accumulation path.
    result, losses = coarse_pred_loss(coarse_pred, target, h_block=8)
    up = jax.block_until_ready(result['coarse_pred'])
    loss = jax.block_until_ready(losses['coarse_loss'])

    # Pure-JAX reference (same interpolation matrices + masked cross-entropy).
    Wy = jnp.asarray(_interp_matrix(H, h))
    WxT = jnp.asarray(_interp_matrix(W, w).T)
    up_ref = jnp.einsum('yh,nchw,wx->ncyx', Wy, coarse_pred, WxT)
    lse = jax.scipy.special.logsumexp(up_ref, axis=1)                     # (N, H, W)
    tgt_safe = jnp.clip(target, 0, C - 1)
    sel = jnp.take_along_axis(up_ref, tgt_safe[:, None, :, :], axis=1)[:, 0]
    valid = target != -100
    loss_ref = jnp.sum(jnp.where(valid, lse - sel, 0.0)) / jnp.sum(valid)

    assert jnp.allclose(up, up_ref, atol=1e-5, rtol=1e-5), "upsample mismatch"
    assert jnp.allclose(loss, loss_ref, atol=1e-5, rtol=1e-5), "loss mismatch"
    print("KERNEL_OK")
</pallas_src>

<mosaic_0001>
module attributes {stable_mosaic.version = 11 : i64} {
  func.func @_coarse_pred_loss_kernel(%arg0: i32, %arg1: i32, %arg2: memref<1x4x8x8xf32, #tpu.memory_space<vmem>>, %arg3: memref<8x8xf32, #tpu.memory_space<vmem>>, %arg4: memref<8x16xf32, #tpu.memory_space<vmem>>, %arg5: memref<1x8x16xi32, #tpu.memory_space<vmem>>, %arg6: memref<1x4x8x16xf32, #tpu.memory_space<vmem>>, %arg7: memref<1x1x1xf32, #tpu.memory_space<vmem>>, %arg8: memref<1x1x1xf32, #tpu.memory_space<vmem>>, %arg9: memref<4x8x16xf32, #tpu.memory_space<vmem>>) attributes {dimension_semantics = [#tpu.dimension_semantics<parallel>, #tpu.dimension_semantics<arbitrary>], iteration_bounds = array<i64: 2, 2>, scalar_prefetch = 0 : i64, scratch_operands = 1 : i64, tpu.core_type = #tpu.core_type<tc>, window_params = [{transform_indices = @transform_0, window_bounds = array<i64: 1, 4, 8, 8>}, {transform_indices = @transform_1, window_bounds = array<i64: 8, 8>}, {pipeline_mode = #tpu.pipeline_mode<synchronous>, transform_indices = @transform_2, window_bounds = array<i64: 8, 16>}, {transform_indices = @transform_3, window_bounds = array<i64: 1, 8, 16>}, {transform_indices = @transform_4, window_bounds = array<i64: 1, 4, 8, 16>}, {transform_indices = @transform_5, window_bounds = array<i64: 1, 1, 1>}, {transform_indices = @transform_6, window_bounds = array<i64: 1, 1, 1>}]} {
    %c0_i32 = arith.constant 0 : i32
    %0 = arith.cmpi eq, %arg1, %c0_i32 : i32
    %1 = arith.extui %0 : i1 to i32
    %c0_i32_0 = arith.constant 0 : i32
    %2 = arith.cmpi ne, %1, %c0_i32_0 : i32
    scf.if %2 {
      %cst_72 = arith.constant 0.000000e+00 : f32
      %108 = vector.broadcast %cst_72 : f32 to vector<1x1xf32>
      %c0_73 = arith.constant 0 : index
      %c0_74 = arith.constant 0 : index
      %c0_75 = arith.constant 0 : index
      %109 = vector.load %arg7[%c0_73, %c0_74, %c0_75] : memref<1x1x1xf32, #tpu.memory_space<vmem>>, vector<1x1x1xf32>
      %110 = vector.shape_cast %109 : vector<1x1x1xf32> to vector<1x1xf32>
      %111 = vector.shape_cast %108 : vector<1x1xf32> to vector<1x1x1xf32>
      tpu.vector_store %arg7[%c0_73, %c0_74, %c0_75], %111 {strides = array<i32>} : memref<1x1x1xf32, #tpu.memory_space<vmem>>, vector<1x1x1xf32>,
      %cst_76 = arith.constant 0.000000e+00 : f32
      %112 = vector.broadcast %cst_76 : f32 to vector<1x1xf32>
      %c0_77 = arith.constant 0 : index
      %c0_78 = arith.constant 0 : index
      %c0_79 = arith.constant 0 : index
      %113 = vector.load %arg8[%c0_77, %c0_78, %c0_79] : memref<1x1x1xf32, #tpu.memory_space<vmem>>, vector<1x1x1xf32>
      %114 = vector.shape_cast %113 : vector<1x1x1xf32> to vector<1x1xf32>
      %115 = vector.shape_cast %112 : vector<1x1xf32> to vector<1x1x1xf32>
      tpu.vector_store %arg8[%c0_77, %c0_78, %c0_79], %115 {strides = array<i32>} : memref<1x1x1xf32, #tpu.memory_space<vmem>>, vector<1x1x1xf32>,
      %c0_80 = arith.constant 0 : index
      %c0_81 = arith.constant 0 : index
      %c0_82 = arith.constant 0 : index
      %c0_83 = arith.constant 0 : index
      %116 = vector.load %arg2[%c0_80, %c0_81, %c0_82, %c0_83] : memref<1x4x8x8xf32, #tpu.memory_space<vmem>>, vector<1x4x8x8xf32>
      %117 = vector.shape_cast %116 : vector<1x4x8x8xf32> to vector<4x8x8xf32>
      %c0_84 = arith.constant 0 : index
      %c0_85 = arith.constant 0 : index
      %118 = vector.load %arg4[%c0_84, %c0_85] : memref<8x16xf32, #tpu.memory_space<vmem>>, vector<8x16xf32>
      %119 = vector.shape_cast %117 : vector<4x8x8xf32> to vector<32x8xf32>
      %cst_86 = arith.constant dense<0.000000e+00> : vector<32x16xf32>
      %120 = tpu.matmul %119, %118, %cst_86 {dimension_numbers = #tpu.dot_dimension_numbers<[1], [0], [0], [1], [0, 0, 1, 1], [], []>} : vector<32x8xf32>, vector<8x16xf32>, vector<32x16xf32> -> vector<32x16xf32>
      %121 = vector.shape_cast %120 : vector<32x16xf32> to vector<4x8x16xf32>
      %c0_87 = arith.constant 0 : index
      %c0_88 = arith.constant 0 : index
      %c0_89 = arith.constant 0 : index
      %122 = vector.load %arg9[%c0_87, %c0_88, %c0_89] : memref<4x8x16xf32, #tpu.memory_space<vmem>>, vector<4x8x16xf32>
      tpu.vector_store %arg9[%c0_87, %c0_88, %c0_89], %121 {strides = array<i32>} : memref<4x8x16xf32, #tpu.memory_space<vmem>>, vector<4x8x16xf32>,
    } else {
    }
    %c0 = arith.constant 0 : index
    %c0_1 = arith.constant 0 : index
    %3 = vector.load %arg3[%c0, %c0_1] : memref<8x8xf32, #tpu.memory_space<vmem>>, vector<8x8xf32>
    %c0_2 = arith.constant 0 : index
    %c0_3 = arith.constant 0 : index
    %c0_4 = arith.constant 0 : index
    %4 = vector.load %arg5[%c0_2, %c0_3, %c0_4] : memref<1x8x16xi32, #tpu.memory_space<vmem>>, vector<1x8x16xi32>
    %5 = vector.shape_cast %4 : vector<1x8x16xi32> to vector<8x16xi32>
    %cst = arith.constant 0xFF800000 : f32
    %6 = vector.broadcast %cst : f32 to vector<8x16xf32>
    %c0_5 = arith.constant 0 : index
    %c0_6 = arith.constant 0 : index
    %c0_7 = arith.constant 0 : index
    %7 = vector.load %arg9[%c0_5, %c0_6, %c0_7] : memref<4x8x16xf32, #tpu.memory_space<vmem>>, vector<1x8x16xf32>
    %8 = vector.shape_cast %7 : vector<1x8x16xf32> to vector<8x16xf32>
    %cst_8 = arith.constant dense<0.000000e+00> : vector<8x16xf32>
    %9 = tpu.matmul %3, %8, %cst_8 {dimension_numbers = #tpu.dot_dimension_numbers<[1], [0], [0], [1], [0, 0, 1, 1], [], []>} : vector<8x8xf32>, vector<8x16xf32>, vector<8x16xf32> -> vector<8x16xf32>
    %c0_9 = arith.constant 0 : index
    %c0_10 = arith.constant 0 : index
    %c0_11 = arith.constant 0 : index
    %c0_12 = arith.constant 0 : index
    %10 = vector.load %arg6[%c0_9, %c0_10, %c0_11, %c0_12] : memref<1x4x8x16xf32, #tpu.memory_space<vmem>>, vector<1x1x8x16xf32>
    %11 = vector.shape_cast %10 : vector<1x1x8x16xf32> to vector<8x16xf32>
    %12 = vector.shape_cast %9 : vector<8x16xf32> to vector<1x1x8x16xf32>
    tpu.vector_store %arg6[%c0_9, %c0_10, %c0_11, %c0_12], %12 {strides = array<i32>} : memref<1x4x8x16xf32, #tpu.memory_space<vmem>>, vector<1x1x8x16xf32>,
    %13 = arith.maximumf %6, %9 : vector<8x16xf32>
    %c1 = arith.constant 1 : index
    %c0_13 = arith.constant 0 : index
    %c0_14 = arith.constant 0 : index
    %14 = vector.load %arg9[%c1, %c0_13, %c0_14] : memref<4x8x16xf32, #tpu.memory_space<vmem>>, vector<1x8x16xf32>
    %15 = vector.shape_cast %14 : vector<1x8x16xf32> to vector<8x16xf32>
    %cst_15 = arith.constant dense<0.000000e+00> : vector<8x16xf32>
    %16 = tpu.matmul %3, %15, %cst_15 {dimension_numbers = #tpu.dot_dimension_numbers<[1], [0], [0], [1], [0, 0, 1, 1], [], []>} : vector<8x8xf32>, vector<8x16xf32>, vector<8x16xf32> -> vector<8x16xf32>
    %c0_16 = arith.constant 0 : index
    %c1_17 = arith.constant 1 : index
    %c0_18 = arith.constant 0 : index
    %c0_19 = arith.constant 0 : index
    %17 = vector.load %arg6[%c0_16, %c1_17, %c0_18, %c0_19] : memref<1x4x8x16xf32, #tpu.memory_space<vmem>>, vector<1x1x8x16xf32>
    %18 = vector.shape_cast %17 : vector<1x1x8x16xf32> to vector<8x16xf32>
    %19 = vector.shape_cast %16 : vector<8x16xf32> to vector<1x1x8x16xf32>
    tpu.vector_store %arg6[%c0_16, %c1_17, %c0_18, %c0_19], %19 {strides = array<i32>} : memref<1x4x8x16xf32, #tpu.memory_space<vmem>>, vector<1x1x8x16xf32>,
    %20 = arith.maximumf %13, %16 : vector<8x16xf32>
    %c2 = arith.constant 2 : index
    %c0_20 = arith.constant 0 : index
    %c0_21 = arith.constant 0 : index
    %21 = vector.load %arg9[%c2, %c0_20, %c0_21] : memref<4x8x16xf32, #tpu.memory_space<vmem>>, vector<1x8x16xf32>
    %22 = vector.shape_cast %21 : vector<1x8x16xf32> to vector<8x16xf32>
    %cst_22 = arith.constant dense<0.000000e+00> : vector<8x16xf32>
    %23 = tpu.matmul %3, %22, %cst_22 {dimension_numbers = #tpu.dot_dimension_numbers<[1], [0], [0], [1], [0, 0, 1, 1], [], []>} : vector<8x8xf32>, vector<8x16xf32>, vector<8x16xf32> -> vector<8x16xf32>
    %c0_23 = arith.constant 0 : index
    %c2_24 = arith.constant 2 : index
    %c0_25 = arith.constant 0 : index
    %c0_26 = arith.constant 0 : index
    %24 = vector.load %arg6[%c0_23, %c2_24, %c0_25, %c0_26] : memref<1x4x8x16xf32, #tpu.memory_space<vmem>>, vector<1x1x8x16xf32>
    %25 = vector.shape_cast %24 : vector<1x1x8x16xf32> to vector<8x16xf32>
    %26 = vector.shape_cast %23 : vector<8x16xf32> to vector<1x1x8x16xf32>
    tpu.vector_store %arg6[%c0_23, %c2_24, %c0_25, %c0_26], %26 {strides = array<i32>} : memref<1x4x8x16xf32, #tpu.memory_space<vmem>>, vector<1x1x8x16xf32>,
    %27 = arith.maximumf %20, %23 : vector<8x16xf32>
    %c3 = arith.constant 3 : index
    %c0_27 = arith.constant 0 : index
    %c0_28 = arith.constant 0 : index
    %28 = vector.load %arg9[%c3, %c0_27, %c0_28] : memref<4x8x16xf32, #tpu.memory_space<vmem>>, vector<1x8x16xf32>
    %29 = vector.shape_cast %28 : vector<1x8x16xf32> to vector<8x16xf32>
    %cst_29 = arith.constant dense<0.000000e+00> : vector<8x16xf32>
    %30 = tpu.matmul %3, %29, %cst_29 {dimension_numbers = #tpu.dot_dimension_numbers<[1], [0], [0], [1], [0, 0, 1, 1], [], []>} : vector<8x8xf32>, vector<8x16xf32>, vector<8x16xf32> -> vector<8x16xf32>
    %c0_30 = arith.constant 0 : index
    %c3_31 = arith.constant 3 : index
    %c0_32 = arith.constant 0 : index
    %c0_33 = arith.constant 0 : index
    %31 = vector.load %arg6[%c0_30, %c3_31, %c0_32, %c0_33] : memref<1x4x8x16xf32, #tpu.memory_space<vmem>>, vector<1x1x8x16xf32>
    %32 = vector.shape_cast %31 : vector<1x1x8x16xf32> to vector<8x16xf32>
    %33 = vector.shape_cast %30 : vector<8x16xf32> to vector<1x1x8x16xf32>
    tpu.vector_store %arg6[%c0_30, %c3_31, %c0_32, %c0_33], %33 {strides = array<i32>} : memref<1x4x8x16xf32, #tpu.memory_space<vmem>>, vector<1x1x8x16xf32>,
    %34 = arith.maximumf %27, %30 : vector<8x16xf32>
    %cst_34 = arith.constant 0.000000e+00 : f32
    %35 = vector.broadcast %cst_34 : f32 to vector<8x16xf32>
    %cst_35 = arith.constant 0.000000e+00 : f32
    %36 = vector.broadcast %cst_35 : f32 to vector<8x16xf32>
    %c0_36 = arith.constant 0 : index
    %c0_37 = arith.constant 0 : index
    %c0_38 = arith.constant 0 : index
    %c0_39 = arith.constant 0 : index
    %37 = vector.load %arg6[%c0_36, %c0_37, %c0_38, %c0_39] : memref<1x4x8x16xf32, #tpu.memory_space<vmem>>, vector<1x1x8x16xf32>
    %38 = vector.shape_cast %37 : vector<1x1x8x16xf32> to vector<8x16xf32>
    %39 = arith.subf %38, %34 : vector<8x16xf32>
    %40 = math.exp %39 : vector<8x16xf32>
    %41 = arith.addf %35, %40 : vector<8x16xf32>
    %c0_i32_40 = arith.constant 0 : i32
    %42 = vector.broadcast %c0_i32_40 : i32 to vector<8x16xi32>
    %43 = arith.cmpi eq, %5, %42 : vector<8x16xi32>
    %cst_41 = arith.constant 0.000000e+00 : f32
    %44 = vector.broadcast %cst_41 : f32 to vector<8x16xf32>
    %45 = arith.select %43, %38, %44 : vector<8x16xi1>, vector<8x16xf32>
    %46 = arith.addf %36, %45 : vector<8x16xf32>
    %c0_42 = arith.constant 0 : index
    %c1_43 = arith.constant 1 : index
    %c0_44 = arith.constant 0 : index
    %c0_45 = arith.constant 0 : index
    %47 = vector.load %arg6[%c0_42, %c1_43, %c0_44, %c0_45] : memref<1x4x8x16xf32, #tpu.memory_space<vmem>>, vector<1x1x8x16xf32>
    %48 = vector.shape_cast %47 : vector<1x1x8x16xf32> to vector<8x16xf32>
    %49 = arith.subf %48, %34 : vector<8x16xf32>
    %50 = math.exp %49 : vector<8x16xf32>
    %51 = arith.addf %41, %50 : vector<8x16xf32>
    %c1_i32 = arith.constant 1 : i32
    %52 = vector.broadcast %c1_i32 : i32 to vector<8x16xi32>
    %53 = arith.cmpi eq, %5, %52 : vector<8x16xi32>
    %cst_46 = arith.constant 0.000000e+00 : f32
    %54 = vector.broadcast %cst_46 : f32 to vector<8x16xf32>
    %55 = arith.select %53, %48, %54 : vector<8x16xi1>, vector<8x16xf32>
    %56 = arith.addf %46, %55 : vector<8x16xf32>
    %c0_47 = arith.constant 0 : index
    %c2_48 = arith.constant 2 : index
    %c0_49 = arith.constant 0 : index
    %c0_50 = arith.constant 0 : index
    %57 = vector.load %arg6[%c0_47, %c2_48, %c0_49, %c0_50] : memref<1x4x8x16xf32, #tpu.memory_space<vmem>>, vector<1x1x8x16xf32>
    %58 = vector.shape_cast %57 : vector<1x1x8x16xf32> to vector<8x16xf32>
    %59 = arith.subf %58, %34 : vector<8x16xf32>
    %60 = math.exp %59 : vector<8x16xf32>
    %61 = arith.addf %51, %60 : vector<8x16xf32>
    %c2_i32 = arith.constant 2 : i32
    %62 = vector.broadcast %c2_i32 : i32 to vector<8x16xi32>
    %63 = arith.cmpi eq, %5, %62 : vector<8x16xi32>
    %cst_51 = arith.constant 0.000000e+00 : f32
    %64 = vector.broadcast %cst_51 : f32 to vector<8x16xf32>
    %65 = arith.select %63, %58, %64 : vector<8x16xi1>, vector<8x16xf32>
    %66 = arith.addf %56, %65 : vector<8x16xf32>
    %c0_52 = arith.constant 0 : index
    %c3_53 = arith.constant 3 : index
    %c0_54 = arith.constant 0 : index
    %c0_55 = arith.constant 0 : index
    %67 = vector.load %arg6[%c0_52, %c3_53, %c0_54, %c0_55] : memref<1x4x8x16xf32, #tpu.memory_space<vmem>>, vector<1x1x8x16xf32>
    %68 = vector.shape_cast %67 : vector<1x1x8x16xf32> to vector<8x16xf32>
    %69 = arith.subf %68, %34 : vector<8x16xf32>
    %70 = math.exp %69 : vector<8x16xf32>
    %71 = arith.addf %61, %70 : vector<8x16xf32>
    %c3_i32 = arith.constant 3 : i32
    %72 = vector.broadcast %c3_i32 : i32 to vector<8x16xi32>
    %73 = arith.cmpi eq, %5, %72 : vector<8x16xi32>
    %cst_56 = arith.constant 0.000000e+00 : f32
    %74 = vector.broadcast %cst_56 : f32 to vector<8x16xf32>
    %75 = arith.select %73, %68, %74 : vector<8x16xi1>, vector<8x16xf32>
    %76 = arith.addf %66, %75 : vector<8x16xf32>
    %77 = math.log %71 : vector<8x16xf32>
    %78 = arith.addf %34, %77 : vector<8x16xf32>
    %c-100_i32 = arith.constant -100 : i32
    %79 = vector.broadcast %c-100_i32 : i32 to vector<8x16xi32>
    %80 = arith.cmpi ne, %5, %79 : vector<8x16xi32>
    %c0_57 = arith.constant 0 : index
    %c0_58 = arith.constant 0 : index
    %c0_59 = arith.constant 0 : index
    %81 = vector.load %arg7[%c0_57, %c0_58, %c0_59] : memref<1x1x1xf32, #tpu.memory_space<vmem>>, vector<1x1x1xf32>
    %82 = vector.shape_cast %81 : vector<1x1x1xf32> to vector<1x1xf32>
    %83 = arith.subf %78, %76 : vector<8x16xf32>
    %cst_60 = arith.constant 0.000000e+00 : f32
    %84 = vector.broadcast %cst_60 : f32 to vector<8x16xf32>
    %85 = arith.select %80, %83, %84 : vector<8x16xi1>, vector<8x16xf32>
    %86 = vector.shape_cast %85 : vector<8x16xf32> to vector<1x8x16xf32>
    %cst_61 = arith.constant dense<0.000000e+00> : vector<1xf32>
    %87 = vector.multi_reduction <add>, %86, %cst_61 [1, 2] : vector<1x8x16xf32> to vector<1xf32>
    %88 = vector.shape_cast %87 : vector<1xf32> to vector<1x1x1xf32>
    %89 = vector.extract %88[0, 0, 0] : f32 from vector<1x1x1xf32>
    %90 = vector.broadcast %89 : f32 to vector<1x1xf32>
    %91 = arith.addf %82, %90 : vector<1x1xf32>
    %c0_62 = arith.constant 0 : index
    %c0_63 = arith.constant 0 : index
    %c0_64 = arith.constant 0 : index
    %92 = vector.load %arg7[%c0_62, %c0_63, %c0_64] : memref<1x1x1xf32, #tpu.memory_space<vmem>>, vector<1x1x1xf32>
    %93 = vector.shape_cast %92 : vector<1x1x1xf32> to vector<1x1xf32>
    %94 = vector.shape_cast %91 : vector<1x1xf32> to vector<1x1x1xf32>
    tpu.vector_store %arg7[%c0_62, %c0_63, %c0_64], %94 {strides = array<i32>} : memref<1x1x1xf32, #tpu.memory_space<vmem>>, vector<1x1x1xf32>,
    %c0_65 = arith.constant 0 : index
    %c0_66 = arith.constant 0 : index
    %c0_67 = arith.constant 0 : index
    %95 = vector.load %arg8[%c0_65, %c0_66, %c0_67] : memref<1x1x1xf32, #tpu.memory_space<vmem>>, vector<1x1x1xf32>
    %96 = vector.shape_cast %95 : vector<1x1x1xf32> to vector<1x1xf32>
    %97 = arith.extui %80 : vector<8x16xi1> to vector<8x16xi32>
    %98 = arith.sitofp %97 : vector<8x16xi32> to vector<8x16xf32>
    %99 = vector.shape_cast %98 : vector<8x16xf32> to vector<1x8x16xf32>
    %cst_68 = arith.constant dense<0.000000e+00> : vector<1xf32>
    %100 = vector.multi_reduction <add>, %99, %cst_68 [1, 2] : vector<1x8x16xf32> to vector<1xf32>
    %101 = vector.shape_cast %100 : vector<1xf32> to vector<1x1x1xf32>
    %102 = vector.extract %101[0, 0, 0] : f32 from vector<1x1x1xf32>
    %103 = vector.broadcast %102 : f32 to vector<1x1xf32>
    %104 = arith.addf %96, %103 : vector<1x1xf32>
    %c0_69 = arith.constant 0 : index
    %c0_70 = arith.constant 0 : index
    %c0_71 = arith.constant 0 : index
    %105 = vector.load %arg8[%c0_69, %c0_70, %c0_71] : memref<1x1x1xf32, #tpu.memory_space<vmem>>, vector<1x1x1xf32>
    %106 = vector.shape_cast %105 : vector<1x1x1xf32> to vector<1x1xf32>
    %107 = vector.shape_cast %104 : vector<1x1xf32> to vector<1x1x1xf32>
    tpu.vector_store %arg8[%c0_69, %c0_70, %c0_71], %107 {strides = array<i32>} : memref<1x1x1xf32, #tpu.memory_space<vmem>>, vector<1x1x1xf32>,
    return
  }
  func.func @transform_0(%arg0: i32, %arg1: i32) -> (i32, i32, i32, i32) {
    %c0_i32 = arith.constant 0 : i32
    %c0_i32_0 = arith.constant 0 : i32
    %c0_i32_1 = arith.constant 0 : i32
    %c0_i32_2 = arith.constant 0 : i32
    return %arg0, %c0_i32, %c0_i32_0, %c0_i32_1 : i32, i32, i32, i32
  }
  func.func @transform_1(%arg0: i32, %arg1: i32) -> (i32, i32) {
    %c0_i32 = arith.constant 0 : i32
    %c0_i32_0 = arith.constant 0 : i32
    return %arg1, %c0_i32 : i32, i32
  }
  func.func @transform_2(%arg0: i32, %arg1: i32) -> (i32, i32) {
    %c0_i32 = arith.constant 0 : i32
    %c0_i32_0 = arith.constant 0 : i32
    %c0_i32_1 = arith.constant 0 : i32
    return %c0_i32, %c0_i32_0 : i32, i32
  }
  func.func @transform_3(%arg0: i32, %arg1: i32) -> (i32, i32, i32) {
    %c0_i32 = arith.constant 0 : i32
    %c0_i32_0 = arith.constant 0 : i32
    return %arg0, %arg1, %c0_i32 : i32, i32, i32
  }
  func.func @transform_4(%arg0: i32, %arg1: i32) -> (i32, i32, i32, i32) {
    %c0_i32 = arith.constant 0 : i32
    %c0_i32_0 = arith.constant 0 : i32
    %c0_i32_1 = arith.constant 0 : i32
    return %arg0, %c0_i32, %arg1, %c0_i32_0 : i32, i32, i32, i32
  }
  func.func @transform_5(%arg0: i32, %arg1: i32) -> (i32, i32, i32) {
    %c0_i32 = arith.constant 0 : i32
    %c0_i32_0 = arith.constant 0 : i32
    %c0_i32_1 = arith.constant 0 : i32
    return %arg0, %c0_i32, %c0_i32_0 : i32, i32, i32
  }
  func.func @transform_6(%arg0: i32, %arg1: i32) -> (i32, i32, i32) {
    %c0_i32 = arith.constant 0 : i32
    %c0_i32_0 = arith.constant 0 : i32
    %c0_i32_1 = arith.constant 0 : i32
    return %arg0, %c0_i32, %c0_i32_0 : i32, i32, i32
  }
}

</mosaic_0001>

<bundles_post_ra>
// kernel: tpu_custom_call.1
= control target key start
LH: loop header
LB: loop body
LE: loop exit
PB: predicated region body
PF: predicated region fallthrough
CT: control target
= control target key end

     0   :  { %s1780_s0 = inlined_call_operand.hbm [shape: f32[2,4,8,8], index: 0, kind: input, shape index: {}]   ;;  %s1781_s1 = inlined_call_operand.vmem [shape: f32[16,8], index: 1, kind: input, shape index: {}]   ;;  %s1782_s2 = inlined_call_operand.vmem [shape: f32[8,16], index: 2, kind: input, shape index: {}]   ;;  %s1783_s3 = inlined_call_operand.hbm [shape: s32[2,16,16], index: 3, kind: input, shape index: {}]   ;;  %s1784_s4 = inlined_call_operand.hbm [shape: f32[2,4,16,16], index: 4, kind: output, shape index: {0}]   ;;  %s1785_s5 = inlined_call_operand.vmem [shape: f32[2,1,1], index: 5, kind: output, shape index: {1}]   ;;  %s1786_s6 = inlined_call_operand.vmem [shape: f32[2,1,1], index: 6, kind: output, shape index: {2}]  }
   0x1   :  { %1796 = sst [smem:[#allocation17_spill]] %s1780_s0 }
   0x2   :  { %1797 = sst [smem:[#allocation18_spill]] %s1782_s2 }
   0x3   :  { %1798 = sst [smem:[#allocation19_spill]] %s1783_s3 }
   0x4   :  { %1799 = sst [smem:[#allocation20_spill]] %s1784_s4 }
   0x5   :  { %12 = vsyncpa [#allocation4], 0 }
   0x6   :  { %14 = vsyncpa [#allocation4 + $0x1], 0 }
   0x7   :  { %15 = vsyncpa [#allocation7], 0 }
   0x8   :  { %17 = vsyncpa [#allocation7 + $0x1], 0 }
   0x9   :  { %18 = vsyncpa [#allocation5], 0 }
   0xa   :  { %20 = vsyncpa [#allocation5 + $0x1], 0  ;;  %s1472_s21 = smov 0   ;;  %s1474_s22 = smov 0  }
   0xb   :  { %s1476_s23 = smov 0   ;;  %s1478_s24 = smov 0  }
   0xc   :  { %s1480_s25 = smov 0   ;;  %s1482_s26 = smov 0  }
   0xd   :  { %s1484_s27 = smov 0   ;;  %s1486_s28 = smov 0  }
   0xe   :  { %s1488_s29 = smov 0   ;;  %s1490_s30 = smov 0  }
   0xf   :  { %s1492_s7 = smov 0  }
  0x10 LB: > { %1800 = sst [smem:[#allocation12_spill]] %s1384_s21  ;;  %p52_p0 = scmp.ne.s32.totalorder %s1404_s26, %s1400_s25  ;;  %s1424_s7 = sphi %s1492_s7, %s26_s7   ;;  %s1420_s30 = sphi %s1490_s30, %s1823_s30   ;;  %s1416_s29 = sphi %s1488_s29, %s1831_s29   ;;  %s1412_s28 = sphi %s1486_s28, %s1821_s28   ;;  %s1408_s27 = sphi %s1484_s27, %s1830_s27   ;;  %s1404_s26 = sphi %s1482_s26, %s1829_s26   ;;  %s1400_s25 = sphi %s1480_s25, %s1828_s25   ;;  %s1396_s24 = sphi %s1478_s24, %s1827_s24   ;;  %s1392_s23 = sphi %s1476_s23, %s1826_s23   ;;  %s1388_s22 = sphi %s1474_s22, %s1825_s22   ;;  %s1384_s21 = sphi %s1472_s21, %s1824_s21  }
  0x11   : > { %1801 = sst [smem:[#allocation13_spill]] %s1420_s30  ;;  %s45_s8 = sadd.s32 1, %s1404_s26 }
  0x12   : > { %p53_p1 = scmp.eq.s32.totalorder %s1424_s7, 0  ;;  %p1787_p2 = scmp.lt.s32.totalorder %s1424_s7, 4 }
  0x13   : > { %s240_s9 = sand.u32 1, %s1404_s26   ;;  %s1071_s11 = sshll.u32 %s1420_s30, 9 }
  0x14   : > { %p54_p3 = por %p53_p1, %p52_p0  ;;  %s1039_s10 = sshll.u32 %s240_s9, 5 }
  0x15   : > { %s1802_s0 = sld [smem:[#allocation17_spill]]  ;;  %s244_s15 = scalar_lea.vmem [#allocation3], %s1039_s10 }
  0x16   : > { %s251_s16 = sshll.u32 %s244_s15, 4  ;;  %p1541_p4 = pnand %p1787_p2, %p54_p3  ;;  %s252_s16 = int_to_ptr.vmem [resolvable:$true] %s251_s16 }
  0x17   : > { %p1045_p5 = scmp.ge.s32.totalorder %s1424_s7, 1  ;;  %s241_s18 = scalar_lea.sflag [#allocation4], %s240_s9 }
  0x18   : > { %p1246_p6 = pneg %p1541_p4  ;;  %s1257_s19 = scalar_lea.vmem %s252_s16, 512 }
  0x19   : > { %p1258_p7 = scmp.ne.s32.totalorder %s252_s16, %s1257_s19  ;;  %s1426_s20 = smov [#allocation3]  }
  0x1a   : > { %s1262_s12 = sshll.u32 %s1426_s20, 4  ;;  %s1263_s12 = int_to_ptr.vmem [resolvable:$false] %s1262_s12 }
  0x1b   : > { %s250_s14 = scalar_lea.hbm %s1802_s0, %s1071_s11  ;;  %p1260_p8 = pnand %p1258_p7, %p1246_p6 }
  0x1c   : > { %s1264_s10 = scalar_lea.vmem %s1263_s12, 1024  ;;  %p1265_p10 = scmp.lt.s32.totalorder %s252_s16, %s1263_s12 }
  0x1d   : > { %p1261_p9 = pneg %p1260_p8  ;;  %p1266_p11 = scmp.lt.s32.totalorder %s1264_s10, %s1257_s19 }
  0x1f   : > { %p1267_p12 = por %p1266_p11, %p1265_p10 }
  0x21   : > { %p1268_p13 = pnand %p1267_p12, %p1261_p9 }
  0x23   : > { %1271 = shalt.err (!%p1268_p13)
}
  0x24   : > { %s1427_s11 = smov 128   ;;  %s1428_s9 = smov 8  }
  0x25   : > { %1128 = dma.hbm_to_vmem [thread:$0]  (!%p1541_p4), %s250_s14, 512, %s252_s16, %s241_s18, %s1427_s11, %s1427_s11, %s1428_s9  }
  0x26   : > { %p286_p0 = scmp.lt.s32.totalorder %s1424_s7, 5  ;;  %p58_p6 = scmp.ne.s32.totalorder %s1400_s25, %s1396_s24 }
  0x27   : > { %s1035_s15 = sadd.s32 4294967295, %s1424_s7   ;;  %s35_s19 = sadd.s32 1, %s1416_s29 }
  0x28   : > { %p1553_p3 = pnand %p1045_p5, %p286_p0  ;;  %s38_s20 = sadd.s32 1, %s1420_s30 }
  0x29   : > { %p36_p7 = scmp.ge.s32.totalorder %s35_s19, 2  ;;  %p59_p8 = scmp.eq.s32.totalorder %s1035_s15, 0 }
  0x2a   : > { %s1036_s17 = sadd.s32 4294967294, %s1424_s7   ;;  %s120_s14 = sadd.s32 1, %s1392_s23 }
  0x2b   : > { %s1833_s19 = smov (%p36_p7, %s35_s19), 0  ;;  %s1835_s20 = smov (!%p36_p7, %s38_s20), %s1420_s30 }
  0x2c   : > { %1805 = sst [smem:[#allocation14_spill]] %s1833_s19  ;;  %p1567_p4 = por %p59_p8, %p58_p6 }
  0x2d   : > { %p127_p5 = scmp.ne.s32.totalorder %s1392_s23, %s1388_s22  ;;  %p40_p9 = scmp.ge.s32.totalorder %s1835_s20, 2 }
  0x2e   : > { %s116_s24 = ssub.s32 %s1416_s29, %s1833_s19  ;;  %p133_p10 = scmp.ne.s32.totalorder %s1388_s22, %s1384_s21 }
  0x2f   : > { %p159_p11 = scmp.eq.s32.totalorder %s1035_s15, 3  ;;  %s1837_s20 = smov (%p40_p9, %s1835_s20), 0 }
  0x30   : > { %1807 = sst [smem:[#allocation15_spill]] %s1837_s20  ;;  %p1579_p12 = por %p133_p10, %p59_p8 }
  0x31   : > { %p1586_p13 = por %p159_p11, %p127_p5  ;;  %s42_s10 = ssub.s32 %s1420_s30, %s1837_s20 }
  0x32   : > { %p165_p0 = scmp.eq.s32.totalorder %s1036_s17, 3  ;;  %p43_p6 = scmp.eq.s32.totalorder %s42_s10, 0 }
  0x33   : > { %s1809_s12 = scalar_select %p1586_p13, 1, 0 }
  0x34   : > { %s117_s11 = sor.u32 %s116_s24, %s42_s10  ;;  %p1592_p2 = por %p165_p0, %p133_p10 }
  0x35   : > { %1810 = sst [smem:[#allocation16_spill]] %s1809_s12  ;;  %p118_p7 = scmp.eq.s32.totalorder %s117_s11, 0 }
  0x36   : > { %s1811_s9 = scalar_select %p1592_p2, 1, 0 }
  0x37   : > { %s1599_s15 = scalar_select %p43_p6, %s1404_s26, %s45_s8  }
  0x38   : > { %s1602_s0 = scalar_select %p118_p7, %s1392_s23, %s120_s14  }
  0x39   : > { %s268_s19 = sand.u32 1, %s1392_s23   ;;  %s1043_s21 = sshll.u32 %s1420_s30, 1 }
  0x3a   : > { %p129_p8 = por %p127_p5, %p53_p1  ;;  %s1042_s20 = sshll.u32 %s268_s19, 3 }
  0x3b   : > { %s277_s17 = sadd.s32 %s1416_s29, %s1043_s21  ;;  %s272_s12 = scalar_lea.vmem [#allocation6], %s1042_s20 }
  0x3c   : > { %s1044_s4 = sshll.u32 %s277_s17, 7  ;;  %s281_s24 = sshll.u32 %s272_s12, 4  ;;  %s282_s24 = int_to_ptr.vmem [resolvable:$true] %s281_s24 }
  0x3d   : > { %s1812_s3 = sld [smem:[#allocation19_spill]]  ;;  %p1813_p9 = scmp.lt.s32.totalorder %s1424_s7, 4 }
  0x3e   : > { %s269_s14 = scalar_lea.sflag [#allocation7], %s268_s19  ;;  %s1285_s30 = scalar_lea.vmem %s282_s24, 128 }
  0x3f   : > { %p1617_p10 = pnand %p1813_p9, %p129_p8  ;;  %p1286_p1 = scmp.ne.s32.totalorder %s282_s24, %s1285_s30 }
  0x40   : > { %s1429_s21 = smov [#allocation6]  }
  0x41   : > { %p1274_p11 = pneg %p1617_p10  ;;  %s1290_s20 = sshll.u32 %s1429_s21, 4  ;;  %s1291_s20 = int_to_ptr.vmem [resolvable:$false] %s1290_s20 }
  0x42   : > { %s1292_s12 = scalar_lea.vmem %s1291_s20, 256  ;;  %p1293_p6 = scmp.lt.s32.totalorder %s282_s24, %s1291_s20 }
  0x43   : > { %s279_s2 = scalar_lea.hbm %s1812_s3, %s1044_s4  ;;  %p1288_p5 = pnand %p1286_p1, %p1274_p11 }
  0x44   : > { %p1294_p7 = scmp.lt.s32.totalorder %s1292_s12, %s1285_s30 }
  0x45   : > { %p1289_p0 = pneg %p1288_p5 }
  0x46   : > { %p1295_p2 = por %p1294_p7, %p1293_p6 }
  0x48   : > { %p1296_p13 = pnand %p1295_p2, %p1289_p0 }
  0x4a   : > { %1299 = shalt.err (!%p1296_p13)
}
  0x4b   : > { %1131 = dma.hbm_to_vmem [thread:$0]  (!%p1617_p10), %s279_s2, 128, %s282_s24, %s269_s14  }
  0x4c   : > { %290 = sbr.rel (%p1553_p3) target bundleno = 763 (0x2fb), region = 36  ;;  %s292_s4 = sand.u32 (!%p1553_p3), 1, %s1400_s25  }
  0x4d   : > { %s1046_s19 = sshll.u32 (!%p1553_p3), %s292_s4, 5  ;;  %s293_s17 = scalar_lea.sflag (!%p1553_p3), [#allocation4], %s292_s4 }
  0x4e   : > { %s1628_s10 = scalar_lea.vmem (!%p1553_p3), [#allocation3], %s1046_s19 }
  0x51   : > { %1371 = dma.done.wait (%p1567_p4), %s293_s17, 512  }
  0x52   : > { %1373 = vsyncadd (%p1567_p4), %s293_s17, 4294966784  ;;  %s1635_s30 = sand.u32 1, %s1388_s22  }
  0x53   : > { %s1047_s2 = sshll.u32 %s1635_s30, 3  ;;  %s302_s13 = scalar_lea.sflag [#allocation7], %s1635_s30 }
  0x54   : > { %s1639_s24 = scalar_lea.vmem [#allocation6], %s1047_s2 }
  0x55   : > { %1375 = dma.done.wait (%p1579_p12), %s302_s13, 128  }
  0x56   : > { %1377 = vsyncadd (%p1579_p12), %s302_s13, 4294967168  ;;  %s1048_s16 = sshll.u32 %s1635_s30, 5  ;;  %p349_p2 = scmp.lt.s32.totalorder %s1408_s27, 1 }
  0x57   : > { %p353_p3 = scmp.lt.s32.totalorder %s1412_s28, 1  ;;  %s1665_s3 = scalar_lea.vmem [#allocation8], %s1048_s16 }
  0x58   : > { %s350_s11 = scalar_select %p349_p2, %s1408_s27, 1 }
  0x59   : > { %s354_s8 = scalar_select %p353_p3, %s1412_s28, 1 }
  0x5a   : > { %s1049_s14 = sshll.u32 %s350_s11, 3  ;;  %p1050_p4 = scmp.ne.s32.totalorder %s1408_s27, 0 }
  0x5b   : > { %s1653_s12 = scalar_lea.vmem %s1781_s1, %s1049_s14  ;;  %s1658_s18 = scalar_lea.vmem %s1785_s5, %s354_s8 }
  0x5c   : > { %s1663_s13 = scalar_lea.vmem %s1786_s6, %s354_s8  ;;  %362 = sbr.rel (%p1050_p4) target bundleno = 298 (0x12a), region = 48 }
  0x5d   : > { %s1815_s14 = sld [smem:[#allocation18_spill]] (!%p1050_p4) }
  0x61   : > { %vm363_vm0 = vcmask 0   ;;  %v366_v1 = vld [vmem:[%s1628_s10] sm:$0xff]  ;;  %vm371_vm1 = vcmask 64512   ;;  %v368_v2 = vld [vmem:[%s1628_s10 + $0x10] sm:$0xff]  ;;  %v1430_v3 = vmov 0.0   ;;  %v367_v4 = vld [vmem:[%s1628_s10 + $0x8] sm:$0xff] }
  0x62   : > { %364 = vst.msk [vmem:[%s1658_s18] sm:$0x1] %vm363_vm0, %v1430_v3  ;;  %365 = vst.msk [vmem:[%s1663_s13] sm:$0x1] %vm363_vm0, %v1430_v3  ;;  %v369_v5 = vld [vmem:[%s1628_s10 + $0x18] sm:$0xff]  ;;  %1087 = vmatprep.mubr.msk.f32.mxu0 %vm371_vm1, %v366_v1  ;;  %1090 = vmatprep.mubr.msk.f32.mxu1 %vm371_vm1, %v368_v2  ;;  %vm469_vm2 = vcmask 130048  }
  0x63   : > { %v370_v0 = vld [vmem:[%s1815_s14] sm:$0xff] }
  0x64   : > { %1085 = vmatprep.subr.mxu0 %v370_v0  ;;  %1113 = vmatprep.subr.mxu1 %v370_v0 }
  0x65   : > { %1086 = vmatpush3.msra.mxu0 %v370_v0  ;;  %1114 = vmatpush3.msra.mxu1 %v370_v0 }
  0x66   : > { %1088 = vmatmul.mubr.msk.f32.vlgmr.msra.gmra.mxu0 %vm371_vm1, %v367_v4  ;;  %1091 = vmatmul.mubr.msk.f32.vlgmr.msra.gmra.mxu1 %vm371_vm1, %v369_v5 }
 0x126   : > { %v1089_v6 = vpop.f32.mrf.mxu0  ;;  %v1092_v7 = vpop.f32.mrf.mxu1 }
 0x127   : > { %471 = vst.msk [vmem:[#allocation2 + $0x8] sm:$0xff] %vm469_vm2, %v1089_v6  ;;  %473 = vst.msk [vmem:[#allocation2 + $0x18] sm:$0xff] %vm469_vm2, %v1092_v7 }
 0x128   : > { %v450_v8 = vpop.f32.mrf.mxu0  ;;  %v460_v9 = vpop.f32.mrf.mxu1 }
 0x129   : > { %470 = vst.msk [vmem:[#allocation2] sm:$0xff] %vm469_vm2, %v450_v8  ;;  %472 = vst.msk [vmem:[#allocation2 + $0x10] sm:$0xff] %vm469_vm2, %v460_v9 }
 0x12a PF: > { %v1431_v12 = vmov 0.0   ;;  %v474_v13 = vld [vmem:[%s1653_s12] sm:$0xff]  ;;  %vm477_vm3 = vcmask 64512   ;;  %vm1432_vm4 = vmmov 0   ;;  %vm551_vm5 = vcmask 130048   ;;  %s1816_s10 = sld [smem:[#allocation16_spill]] }
 0x12b   : > { %1093 = vmatprep.subr.mxu0 %v1431_v12  ;;  %1098 = vmatprep.subr.mxu1 %v1431_v12  ;;  %v475_v46 = vld [vmem:[%s1639_s24] sm:$0xff]  ;;  %s1067_s24 = sshll.u32 %s1412_s28, 3  ;;  %s868_s20 = sshll.u32 %s1665_s3, 4  ;;  %s1714_s20 = int_to_ptr.vmem [resolvable:$true] %s868_s20 }
 0x12c   : > { %1095 = vmatprep.mubr.msk.f32.mxu0 %vm1432_vm4, %v1431_v12  ;;  %1100 = vmatprep.mubr.msk.f32.mxu1 %vm1432_vm4, %v1431_v12  ;;  %vm783_vm6 = vcmp.eq.s32.totalorder %v475_v46, 0  ;;  %vm791_vm7 = vcmp.eq.s32.totalorder %v475_v46, 1  ;;  %vm799_vm8 = vcmp.eq.s32.totalorder %v475_v46, 2  ;;  %vm807_vm9 = vcmp.eq.s32.totalorder %v475_v46, 3  ;;  %s865_s16 = sadd.s32 %s1408_s27, %s1067_s24  ;;  %s1817_s19 = sld [smem:[#allocation20_spill]] }
 0x12d   : > { %vm813_vm10 = vcmp.ne.s32.totalorder %v475_v46, 4294967196  ;;  %s1068_s8 = sshll.u32 %s865_s16, 7  ;;  %s848_s2 = scalar_lea.sflag [#allocation5], %s1635_s30 }
 0x12e   : > { %v554_v11 = vld [vmem:[#allocation2 + $0x8] sm:$0xff]  ;;  %v704_v15 = vld [vmem:[#allocation2 + $0x18] sm:$0xff]  ;;  %v1065_v59 = vsel %vm813_vm10, 1.0, %v1431_v12  ;;  %s1300_s11 = scalar_lea.vmem %s1714_s20, 512  ;;  %s1433_s28 = smov [#allocation8]  }
 0x12f   : > { %1099 = vmatpush3.msra.mxu1 %v554_v11  ;;  %v834_v61 = vsel %vm551_vm5, %v1065_v59, 0.0  ;;  %p1301_p12 = scmp.ne.s32.totalorder %s1714_s20, %s1300_s11  ;;  %s1304_s27 = sshll.u32 %s1433_s28, 4  ;;  %s1305_s27 = int_to_ptr.vmem [resolvable:$false] %s1304_s27 }
 0x130   : > { %v476_v10 = vld [vmem:[#allocation2] sm:$0xff]  ;;  %v629_v14 = vld [vmem:[#allocation2 + $0x10] sm:$0xff]  ;;  %1101 = vmatmul.mubr.msk.f32.vlgmr.msra.gmra.mxu1 %vm477_vm3, %v474_v13  ;;  %1108 = vmatprep.subr.mxu1 %v1431_v12  ;;  %p1818_p13 = scmp.ne.s32.totalorder %s1816_s10, 0  ;;  %p1307_p10 = scmp.lt.s32.totalorder %s1714_s20, %s1305_s27 }
 0x131   : > { %1094 = vmatpush3.msra.mxu0 %v476_v10  ;;  %1109 = vmatpush3.msra.mxu1 %v704_v15 }
 0x132   : > { %1096 = vmatmul.mubr.msk.f32.vlgmr.msra.gmra.mxu0 %vm477_vm3, %v474_v13  ;;  %1103 = vmatprep.subr.mxu0 %v1431_v12  ;;  %s1712_s17 = scalar_lea.hbm %s1817_s19, %s1068_s8  ;;  %p1302_p8 = pnand %p1301_p12, %p1818_p13 }
 0x133   : > { %1104 = vmatpush3.msra.mxu0 %v629_v14  ;;  %1105 = vmatprep.mubr.msk.f32.mxu0 %vm1432_vm4, %v1431_v12 }
 0x134   : > { %1110 = vmatprep.mubr.msk.f32.mxu1 %vm1432_vm4, %v1431_v12  ;;  %p1303_p9 = pneg %p1302_p8 }
 0x135   : > { %1111 = vmatmul.mubr.msk.f32.vlgmr.msra.gmra.mxu1 %vm477_vm3, %v474_v13 }
 0x136   : > { %1106 = vmatmul.mubr.msk.f32.vlgmr.msra.gmra.mxu0 %vm477_vm3, %v474_v13 }
 0x1f0   : > { %v621_v17 = vpop.f32.mrf.mxu1 }
 0x1f1   : > { %1057 = vst.msk [vmem:[%s1665_s3 + $0x8] sm:$0xff] %vm551_vm5, %v621_v17 }
 0x1f2   : > { %v547_v16 = vpop.f32.mrf.mxu0  ;;  %v1102_v19 = vpop.f32.mrf.mxu1 }
 0x1f3   : > { %552 = vst.msk [vmem:[%s1665_s3] sm:$0xff] %vm551_vm5, %v547_v16  ;;  %v627_v20 = vmax.f32 %v547_v16, %v621_v17 }
 0x1f4   : > { %v1097_v18 = vpop.f32.mrf.mxu0 }
 0x1f5   : > { %v771_v22 = vpop.f32.mrf.mxu1 }
 0x1f6   : > { %v696_v21 = vpop.f32.mrf.mxu0  ;;  %1061 = vst.msk [vmem:[%s1665_s3 + $0x18] sm:$0xff] %vm551_vm5, %v771_v22 }
 0x1f7   : > { %1059 = vst.msk [vmem:[%s1665_s3 + $0x10] sm:$0xff] %vm551_vm5, %v696_v21  ;;  %v702_v23 = vmax.f32 %v627_v20, %v696_v21  ;;  %v1112_v25 = vpop.f32.mrf.mxu1 }
 0x1f8   : > { %v1107_v24 = vpop.f32.mrf.mxu0  ;;  %v1062_v28 = vld [vmem:[%s1665_s3 + $0x8] sm:$0xff] }
 0x1f9   : > { %v777_v26 = vmax.f32 %v702_v23, %v771_v22  ;;  %v792_v48 = vsel %vm791_vm7, %v1062_v28, 0.0 }
 0x1fa   : > { %v778_v27 = vld [vmem:[%s1665_s3] sm:$0xff] }
 0x1fb   : > { %v779_v29 = vsub.f32 %v778_v27, %v777_v26  ;;  %v787_v30 = vsub.f32 %v1062_v28, %v777_v26  ;;  %v784_v47 = vsel %vm783_vm6, %v778_v27, 0.0 }
 0x1fc   : > { %v793_v50 = vadd.f32 %v792_v48, %v784_v47 }
 0x1fd   : > { %v780_v31 = vmul.f32 1.442695, %v779_v29  ;;  %v788_v32 = vmul.f32 1.442695, %v787_v30  ;;  %v1064_v34 = vld [vmem:[%s1665_s3 + $0x18] sm:$0xff] }
 0x1fe   : > { %v1063_v33 = vld [vmem:[%s1665_s3 + $0x10] sm:$0xff]  ;;  %v803_v36 = vsub.f32 %v1064_v34, %v777_v26  ;;  %v808_v53 = vsel %vm807_vm9, %v1064_v34, 0.0  ;;  %s1306_s3 = scalar_lea.vmem %s1305_s27, 1024 }
 0x1ff   : > { %1234 = vpow2.f32 %v780_v31  ;;  %v795_v35 = vsub.f32 %v1063_v33, %v777_v26  ;;  %v800_v49 = vsel %vm799_vm8, %v1063_v33, 0.0  ;;  %p1308_p11 = scmp.lt.s32.totalorder %s1306_s3, %s1300_s11 }
 0x200   : > { %1236 = vpow2.f32 %v788_v32  ;;  %v804_v38 = vmul.f32 1.442695, %v803_v36  ;;  %v801_v51 = vadd.f32 %v800_v49, %v793_v50 }
 0x201   : > { %v796_v37 = vmul.f32 1.442695, %v795_v35  ;;  %p1309_p1 = por %p1308_p11, %p1307_p10 }
 0x202   : > { %v809_v55 = vadd.f32 %v808_v53, %v801_v51 }
 0x203   : > { %1238 = vpow2.f32 %v796_v37  ;;  %p1310_p5 = pnand %p1309_p1, %p1303_p9 }
 0x204   : > { %1240 = vpow2.f32 %v804_v38 }
 0x20c   : > { %v1235_v39 = vpop.eup %1234 }
 0x20d   : > { %v1237_v40 = vpop.eup %1236 }
 0x20e   : > { %v790_v41 = vadd.f32 %v1237_v40, %v1235_v39 }
 0x210   : > { %v1239_v42 = vpop.eup %1238 }
 0x211   : > { %v798_v43 = vadd.f32 %v1239_v42, %v790_v41  ;;  %v1241_v44 = vpop.eup %1240 }
 0x213   : > { %v806_v45 = vadd.f32 %v1241_v44, %v798_v43 }
 0x215   : > { %1242 = vlog2.f32 %v806_v45 }
 0x222   : > { %v1243_v52 = vpop.eup %1242 }
 0x223   : > { %v811_v54 = vmul.f32 0.6931472, %v1243_v52 }
 0x225   : > { %v812_v56 = vadd.f32 %v811_v54, %v777_v26 }
 0x227   : > { %v815_v57 = vsub.f32 %v812_v56, %v809_v55 }
 0x229   : > { %v816_v58 = vsel %vm813_vm10, %v815_v57, 0.0 }
 0x22a   : > { %v817_v60 = vsel %vm551_vm5, %v816_v58, 0.0 }
 0x22b   : > { %818 = vadd.xlane.f32.xlu0 %v817_v60 }
 0x22f   : > { %835 = vadd.xlane.f32.xlu0 %v834_v61 }
 0x230   : > { %1313 = shalt.err (!%p1310_p5)
}
 0x231   : > { %s1314_s21 = scalar_lea.hbm %s1712_s17, 512  ;;  %s1318_s16 = scalar_lea.hbm %s1817_s19, 2048 }
 0x232   : > { %p1315_p0 = scmp.ne.s32.totalorder %s1712_s17, %s1314_s21  ;;  %p1319_p2 = scmp.lt.s32.totalorder %s1712_s17, %s1817_s19 }
 0x233   : > { %p1320_p3 = scmp.lt.s32.totalorder %s1318_s16, %s1314_s21 }
 0x234   : > { %p1316_p6 = pnand %p1315_p0, %p1818_p13 }
 0x235   : > { %p1321_p4 = por %p1320_p3, %p1319_p2 }
 0x236   : > { %p1317_p7 = pneg %p1316_p6 }
 0x238   : > { %p1322_p12 = pnand %p1321_p4, %p1317_p7 }
 0x23a   : > { %1325 = shalt.err (!%p1322_p12)
}
 0x23b   : > { %s1434_s4 = smov 128   ;;  %s1435_s11 = smov 256   ;;  %v814_v12 = vld [vmem:[%s1658_s18] sm:$0x1]  ;;  %vm829_vm11 = vcmask 0  }
 0x23c   : > { %s1436_s28 = smov 8   ;;  %v831_v15 = vld [vmem:[%s1663_s13] sm:$0x1] }
 0x23d   : > { %1123 = dma.vmem_to_hbm [thread:$0]  (%p1818_p13), %s1714_s20, 512, %s1712_s17, %s848_s2, %s1434_s4, %s1435_s11, %s1436_s28  }
 0x2b4   : > { %v819_v62 = vpop.xlane.xlu0 %818 }
 0x2b5   : > { %v820_v63 = vrot.slane %v819_v62, 4 }
 0x2b7   : > { %v821_v0 = vadd.f32 %v820_v63, %v819_v62 }
 0x2b8   : > { %v836_v1 = vpop.xlane.xlu0 %835 }
 0x2b9   : > { %v822_v2 = vrot.slane %v821_v0, 2  ;;  %v837_v3 = vrot.slane %v836_v1, 4 }
 0x2bb   : > { %v838_v4 = vadd.f32 %v837_v3, %v836_v1  ;;  %v823_v5 = vadd.f32 %v822_v2, %v821_v0 }
 0x2bd   : > { %v839_v6 = vrot.slane %v838_v4, 2  ;;  %v824_v7 = vrot.slane %v823_v5, 1 }
 0x2bf   : > { %v840_v8 = vadd.f32 %v839_v6, %v838_v4  ;;  %v825_v9 = vadd.f32 %v824_v7, %v823_v5 }
 0x2c1   : > { %1115 = vpush %v825_v9  ;;  %v841_v10 = vrot.slane %v840_v8, 1 }
 0x2c3   : > { %v842_v11 = vadd.f32 %v841_v10, %v840_v8 }
 0x2c5   : > { %1117 = vpush %v842_v11 }
 0x2f2   : > { %s1116_s30 = spop %1115 }
 0x2f3   : > { %v827_v13 = vstv %s1116_s30 }
 0x2f4   : > { %v828_v14 = vadd.f32 %v827_v13, %v814_v12 }
 0x2f6   : > { %830 = vst.msk [vmem:[%s1658_s18] sm:$0x1] %vm829_vm11, %v828_v14  ;;  %s1118_s10 = spop %1117 }
 0x2f7   : > { %v844_v16 = vstv %s1118_s10 }
 0x2f8   : > { %v845_v17 = vadd.f32 %v844_v16, %v831_v15 }
 0x2fa   : > { %846 = vst.msk [vmem:[%s1663_s13] sm:$0x1] %vm829_vm11, %v845_v17 }
 0x2fb PF: > { %s1819_s20 = sld [smem:[#allocation12_spill]]  ;;  %p1137_p13 = scmp.ge.s32.totalorder %s1424_s7, 2 }
 0x2fc   : > { %p1820_p8 = scmp.ne.s32.totalorder %s1811_s9, 0 }
 0x2fe   : > { %p1133_p9 = pnand %p1137_p13, %p1820_p8 }
 0x300   : > { %p1134_p10 = pneg %p1133_p9 }
 0x301   : > { %s889_s17 = sand.u32 1, %s1819_s20  }
 0x302   : > { %s890_s2 = scalar_lea.sflag [#allocation5], %s889_s17 }
 0x303   : > { %1379 = dma.done.wait (%p1134_p10), %s890_s2, 512  }
 0x304   : > { %1381 = vsyncadd (%p1134_p10), %s890_s2, 4294966784  ;;  %s26_s7 = sadd.s32 1, %s1424_s7   ;;  %s1821_s28 = sld [smem:[#allocation13_spill]] }
 0x305   : > { %p23_p11 = scmp.ge.s32.totalorder %s26_s7, 6   ;;  %s1822_s18 = sld [smem:[#allocation14_spill]] }
 0x306   : > { %s1823_s30 = sld [smem:[#allocation15_spill]]  ;;  %s1824_s21 = smov %s1388_s22 }
 0x307   : > { %s1825_s22 = smov %s1392_s23  ;;  %s1826_s23 = smov %s1602_s0 }
 0x308   : > { %s1827_s24 = smov %s1400_s25  ;;  %s1828_s25 = smov %s1404_s26 }
 0x309   : > { %s1829_s26 = smov %s1599_s15  ;;  %s1830_s27 = smov %s1416_s29 }
 0x30a   :  { %25 = sbr.rel (!%p23_p11) target bundleno = 16 (0x10), region = 131 }
 0x30b   : > { %s1831_s29 = smov %s1822_s18 }
 0x30f   :  { %907 = vsyncpa [#allocation4], 1 }
 0x310   :  { %909 = vsyncpa [#allocation4 + $0x1], 1 }
 0x311   :  { %910 = vsyncpa [#allocation7], 1 }
 0x312   :  { %912 = vsyncpa [#allocation7 + $0x1], 1 }
 0x313   :  { %913 = vsyncpa [#allocation5], 1 }
 0x314   :  { %915 = vsyncpa [#allocation5 + $0x1], 1 }

</bundles_post_ra>
